<compile_context>
chip_gen: v7x
topology: tpu7x:2x2x1
jax: 0.10.0
libtpu: 0.0.40
codegen_flags: <defaults>
</compile_context>

<pallas_src>
import functools

import jax
import jax.numpy as jnp
from jax.experimental import pallas as pl
from jax.experimental.pallas import tpu as pltpu


def _round_up(x: int, m: int) -> int:
    return ((x + m - 1) // m) * m


def _qfl_kernel(pred_ref, label_ref, score_ref, out_ref, *, beta: float,
                n_valid: int):
    # pred_ref: (tile, C) contiguous rows of pred in native dtype.
    tile, num_classes = pred_ref.shape

    # Upcast in-register, then one XLU transpose to the lane-dense (C, tile)
    # layout (N on the 128-wide lane axis, small class dim C on sublanes).
    # (pltpu.einshape("nc->cn", x) is the lane-layout-aware alternative.)
    x = jnp.transpose(pred_ref[...].astype(jnp.float32))      # (C, tile)

    label = label_ref[...]                                    # (1, tile) int32
    score = score_ref[...]                                    # (1, tile) f32

    # Column-validity mask for the ragged last pred block (n_valid is static).
    col = (jax.lax.broadcasted_iota(jnp.int32, (1, tile), 1)
           + pl.program_id(0) * tile)
    valid = col < n_valid                                     # (1, tile)

    # Pre-clamp the label row once so the (C, tile) positive test is a single
    # compare: invalid columns / background labels -> -1 (matches no row).
    label_ok = valid & (label >= 0) & (label < num_classes)
    label_cl = jnp.where(label_ok, label, -1)
    row = jax.lax.broadcasted_iota(jnp.int32, x.shape, 0)
    is_pos = row == label_cl                                  # (C, tile)

    # One exp per element shared by softplus and sigmoid; exact divide
    # (no approx reciprocal -> numerically matches the reference).
    e = jnp.exp(-jnp.abs(x))
    softplus = jnp.maximum(x, 0.0) + jnp.log1p(e)             # stable BCE term
    inv = 1.0 / (1.0 + e)
    sig = jnp.where(x >= 0.0, inv, e * inv)                   # sigmoid(x)

    # BCE-with-logits against target (= score at the positive class, else 0).
    target = jnp.where(is_pos, score, 0.0)
    bce = softplus - target * x

    # Modulating factor: sigmoid^beta for background,
    # |score - sigmoid|^beta at the positive-class element.
    scale = jnp.where(is_pos, jnp.abs(score - sig), sig)
    if float(beta) == int(beta):
        mod = jax.lax.integer_pow(scale, int(beta))           # beta=2: 1 mul
    else:
        mod = scale ** beta

    # Per-sample loss: sum over the class (sublane) axis -> lane-dense (1, tile).
    loss = jnp.sum(bce * mod, axis=0, keepdims=True)
    out_ref[...] = jnp.where(valid, loss, 0.0)


def _qfl_per_sample(pred, label, score, *, beta=2.0, tile_n=8192):
    """Per-sample QFL, shape (N,), computed by a Pallas TPU kernel."""
    n, c = pred.shape

    # Lane-tile sizing.  Per-column VMEM estimate = double-buffered pred rows
    # + ~8 materialized (C, tile) f32 temporaries + label/score/out buffers;
    # budget kept well under v7x's 64 MiB physical VMEM.
    vmem_budget_bytes = 32 * 1024 * 1024
    bytes_per_col = 2 * c * pred.dtype.itemsize + 8 * c * 4 + 24
    max_tile = max(128, (vmem_budget_bytes // bytes_per_col) // 128 * 128)
    tile = max(128, min(int(tile_n), max_tile) // 128 * 128)
    # Keep >= ~8 grid steps for large N so the "parallel" axis load-balances
    # across v7x's two TensorCores (never shrink below 512 columns though).
    tile = min(tile, max(512, _round_up(pl.cdiv(n, 8), 128)))
    tile = min(tile, _round_up(n, 128))
    n_pad = _round_up(n, tile)

    # pred stays (N, C) in HBM: contiguous row-tile DMA, native dtype, no
    # transpose/pad copy.  Only the tiny label/score vectors are padded.
    label1 = label.astype(jnp.int32)
    score1 = score.astype(jnp.float32)
    if n_pad != n:
        pad = n_pad - n
        label1 = jnp.pad(label1, (0, pad), constant_values=c)   # background
        score1 = jnp.pad(score1, (0, pad))
    label2d = label1.reshape(1, n_pad)
    score2d = score1.reshape(1, n_pad)

    kernel = functools.partial(_qfl_kernel, beta=float(beta), n_valid=n)
    # NOTE: if a profile ever shows exposed DMA (per-step pred bytes are small
    # for tiny C / bf16), add pipeline_mode=pl.Buffered(3) to the in_specs.
    out = pl.pallas_call(
        kernel,
        out_shape=jax.ShapeDtypeStruct((1, n_pad), jnp.float32),
        grid_spec=pltpu.PrefetchScalarGridSpec(
            num_scalar_prefetch=0,
            grid=(n_pad // tile,),
            in_specs=[
                # Ragged last block of pred is allowed; the overhang is masked
                # in-kernel and never reaches the kept output columns.
                pl.BlockSpec((tile, c), lambda i: (i, 0)),   # pred  (N, C)
                pl.BlockSpec((1, tile), lambda i: (0, i)),   # label (1, Npad)
                pl.BlockSpec((1, tile), lambda i: (0, i)),   # score (1, Npad)
            ],
            out_specs=pl.BlockSpec((1, tile), lambda i: (0, i)),
        ),
        compiler_params=pltpu.CompilerParams(
            dimension_semantics=("parallel",),
            vmem_limit_bytes=48 * 1024 * 1024,   # <= v7x 64 MiB physical VMEM
        ),
    )(pred, label2d, score2d)

    return out[0, :n]


class QualityFocalLoss:
    """JAX/Pallas port of nanodet QualityFocalLoss (use_sigmoid=True only)."""

    def __init__(self, use_sigmoid=True, beta=2.0, reduction="mean",
                 loss_weight=1.0):
        assert use_sigmoid is True, "Only sigmoid in QFL supported now."
        self.use_sigmoid = use_sigmoid
        self.beta = beta
        self.reduction = reduction
        self.loss_weight = loss_weight

    def __call__(self, pred, target, weight=None, avg_factor=None,
                 reduction_override=None):
        assert reduction_override in (None, "none", "mean", "sum")
        reduction = reduction_override if reduction_override else self.reduction

        label, score = target
        loss = _qfl_per_sample(pred, label, score, beta=self.beta)  # (N,)

        # mmdet weight_reduce_loss semantics (cheap (N,) glue kept in JAX).
        if weight is not None:
            loss = loss * weight.astype(loss.dtype)
        if avg_factor is None:
            if reduction == "mean":
                loss = jnp.mean(loss)
            elif reduction == "sum":
                loss = jnp.sum(loss)
        else:
            if reduction == "mean":
                loss = jnp.sum(loss) / avg_factor
            elif reduction != "none":
                raise ValueError("avg_factor can not be used with reduction='sum'")
        return self.loss_weight * loss


def _qfl_reference(pred, label, score, beta=2.0):
    """Pure-JAX reference for correctness checking."""
    n, c = pred.shape
    pred = pred.astype(jnp.float32)
    sig = jax.nn.sigmoid(pred)
    col = jnp.arange(c, dtype=jnp.int32)[None, :]
    lab = label.astype(jnp.int32)[:, None]
    sc = score.astype(jnp.float32)[:, None]
    is_pos = (lab >= 0) & (lab < c) & (col == lab)
    tgt = jnp.where(is_pos, sc, 0.0)
    softplus = jnp.maximum(pred, 0.0) + jnp.log1p(jnp.exp(-jnp.abs(pred)))
    bce = softplus - tgt * pred
    scale = jnp.where(is_pos, jnp.abs(sc - sig), sig)
    return jnp.sum(bce * scale ** beta, axis=1)


if __name__ == "__main__":
    key = jax.random.PRNGKey(0)
    k1, k2, k3 = jax.random.split(key, 3)

    # N deliberately NOT a multiple of 128 to exercise the ragged-tail path.
    N, C = 300, 16
    pred = jax.random.normal(k1, (N, C), dtype=jnp.float32) * 2.0
    # Labels in [0, C]; value C means background (negative sample).
    label = jax.random.randint(k2, (N,), 0, C + 1, dtype=jnp.int32)
    # Quality (IoU) targets in [0, 1); zero for negatives.
    score = jax.random.uniform(k3, (N,), dtype=jnp.float32)
    score = jnp.where(label < C, score, 0.0)

    loss_fn = QualityFocalLoss(use_sigmoid=True, beta=2.0,
                               reduction="mean", loss_weight=1.0)
    loss_mean = loss_fn(pred, (label, score))
    loss_none = loss_fn(pred, (label, score), reduction_override="none")
    jax.block_until_ready((loss_mean, loss_none))

    ref = _qfl_reference(pred, label, score, beta=2.0)
    assert loss_none.shape == (N,)
    assert jnp.allclose(loss_none, ref, rtol=1e-3, atol=1e-3), "per-sample mismatch"
    assert jnp.allclose(loss_mean, jnp.mean(ref), rtol=1e-3, atol=1e-3), (
        loss_mean, jnp.mean(ref))

    # Native-dtype path: bf16 pred is DMA'd as bf16 and upcast in-register;
    # the reference upcasts the same bf16 values, so results match tightly.
    pred_bf16 = pred.astype(jnp.bfloat16)
    loss_bf16 = loss_fn(pred_bf16, (label, score), reduction_override="none")
    jax.block_until_ready(loss_bf16)
    ref_bf16 = _qfl_reference(pred_bf16, label, score, beta=2.0)
    assert jnp.allclose(loss_bf16, ref_bf16, rtol=1e-3, atol=1e-3), "bf16 mismatch"

    print("KERNEL_OK")
</pallas_src>

<mosaic_0001>
module attributes {stable_mosaic.version = 11 : i64} {
  func.func @_qfl_kernel(%arg0: i32, %arg1: memref<384x16xf32, #tpu.memory_space<vmem>>, %arg2: memref<1x384xi32, #tpu.memory_space<vmem>>, %arg3: memref<1x384xf32, #tpu.memory_space<vmem>>, %arg4: memref<1x384xf32, #tpu.memory_space<vmem>>) attributes {dimension_semantics = [#tpu.dimension_semantics<parallel>], iteration_bounds = array<i64: 1>, scalar_prefetch = 0 : i64, scratch_operands = 0 : i64, tpu.core_type = #tpu.core_type<tc>, window_params = [{transform_indices = @transform_0, window_bounds = array<i64: 384, 16>}, {transform_indices = @transform_1, window_bounds = array<i64: 1, 384>}, {transform_indices = @transform_2, window_bounds = array<i64: 1, 384>}, {transform_indices = @transform_3, window_bounds = array<i64: 1, 384>}]} {
    %c0 = arith.constant 0 : index
    %c0_0 = arith.constant 0 : index
    %0 = vector.load %arg1[%c0, %c0_0] : memref<384x16xf32, #tpu.memory_space<vmem>>, vector<384x16xf32>
    %1 = tpu.transpose %0, [1, 0] : vector<384x16xf32> -> vector<16x384xf32>
    %c0_1 = arith.constant 0 : index
    %c0_2 = arith.constant 0 : index
    %2 = vector.load %arg2[%c0_1, %c0_2] : memref<1x384xi32, #tpu.memory_space<vmem>>, vector<1x384xi32>
    %c0_3 = arith.constant 0 : index
    %c0_4 = arith.constant 0 : index
    %3 = vector.load %arg3[%c0_3, %c0_4] : memref<1x384xf32, #tpu.memory_space<vmem>>, vector<1x384xf32>
    %4 = tpu.iota {dimensions = array<i32: 1>} : vector<1x384xi32>
    %c384_i32 = arith.constant 384 : i32
    %5 = arith.muli %arg0, %c384_i32 : i32
    %6 = vector.broadcast %5 : i32 to vector<1x384xi32>
    %7 = arith.addi %4, %6 : vector<1x384xi32>
    %c300_i32 = arith.constant 300 : i32
    %8 = vector.broadcast %c300_i32 : i32 to vector<1x384xi32>
    %9 = arith.cmpi slt, %7, %8 : vector<1x384xi32>
    %c0_i32 = arith.constant 0 : i32
    %10 = vector.broadcast %c0_i32 : i32 to vector<1x384xi32>
    %11 = arith.cmpi sge, %2, %10 : vector<1x384xi32>
    %12 = arith.andi %9, %11 : vector<1x384xi1>
    %c16_i32 = arith.constant 16 : i32
    %13 = vector.broadcast %c16_i32 : i32 to vector<1x384xi32>
    %14 = arith.cmpi slt, %2, %13 : vector<1x384xi32>
    %15 = arith.andi %12, %14 : vector<1x384xi1>
    %c-1_i32 = arith.constant -1 : i32
    %16 = vector.broadcast %c-1_i32 : i32 to vector<1x384xi32>
    %17 = arith.select %15, %2, %16 : vector<1x384xi1>, vector<1x384xi32>
    %18 = tpu.iota {dimensions = array<i32: 0>} : vector<16x384xi32>
    %19 = vector.broadcast %17 : vector<1x384xi32> to vector<16x384xi32>
    %20 = arith.cmpi eq, %18, %19 : vector<16x384xi32>
    %21 = math.absf %1 : vector<16x384xf32>
    %cst = arith.constant 0.000000e+00 : f32
    %22 = vector.broadcast %cst : f32 to vector<16x384xf32>
    %23 = arith.subf %22, %21 : vector<16x384xf32>
    %24 = math.exp %23 : vector<16x384xf32>
    %cst_5 = arith.constant 0.000000e+00 : f32
    %25 = vector.broadcast %cst_5 : f32 to vector<16x384xf32>
    %26 = arith.maximumf %1, %25 : vector<16x384xf32>
    %27 = math.log1p %24 : vector<16x384xf32>
    %28 = arith.addf %26, %27 : vector<16x384xf32>
    %cst_6 = arith.constant 1.000000e+00 : f32
    %29 = vector.broadcast %cst_6 : f32 to vector<16x384xf32>
    %30 = arith.addf %29, %24 : vector<16x384xf32>
    %cst_7 = arith.constant 1.000000e+00 : f32
    %31 = vector.broadcast %cst_7 : f32 to vector<16x384xf32>
    %32 = arith.divf %31, %30 : vector<16x384xf32>
    %cst_8 = arith.constant 0.000000e+00 : f32
    %33 = vector.broadcast %cst_8 : f32 to vector<16x384xf32>
    %34 = arith.cmpf oge, %1, %33 : vector<16x384xf32>
    %35 = arith.mulf %24, %32 : vector<16x384xf32>
    %36 = arith.select %34, %32, %35 : vector<16x384xi1>, vector<16x384xf32>
    %cst_9 = arith.constant 0.000000e+00 : f32
    %37 = vector.shape_cast %3 : vector<1x384xf32> to vector<1x384xf32>
    %38 = vector.broadcast %37 : vector<1x384xf32> to vector<16x384xf32>
    %39 = vector.broadcast %cst_9 : f32 to vector<16x384xf32>
    %40 = arith.select %20, %38, %39 : vector<16x384xi1>, vector<16x384xf32>
    %41 = arith.mulf %40, %1 : vector<16x384xf32>
    %42 = arith.subf %28, %41 : vector<16x384xf32>
    %43 = vector.broadcast %3 : vector<1x384xf32> to vector<16x384xf32>
    %44 = arith.subf %43, %36 : vector<16x384xf32>
    %45 = math.absf %44 : vector<16x384xf32>
    %46 = arith.select %20, %45, %36 : vector<16x384xi1>, vector<16x384xf32>
    %47 = arith.mulf %46, %46 : vector<16x384xf32>
    %48 = arith.mulf %42, %47 : vector<16x384xf32>
    %cst_10 = arith.constant dense<0.000000e+00> : vector<384xf32>
    %49 = vector.multi_reduction <add>, %48, %cst_10 [0] : vector<16x384xf32> to vector<384xf32>
    %50 = vector.shape_cast %49 : vector<384xf32> to vector<1x384xf32>
    %cst_11 = arith.constant 0.000000e+00 : f32
    %51 = vector.broadcast %cst_11 : f32 to vector<1x384xf32>
    %52 = arith.select %9, %50, %51 : vector<1x384xi1>, vector<1x384xf32>
    %c0_12 = arith.constant 0 : index
    %c0_13 = arith.constant 0 : index
    %53 = vector.load %arg4[%c0_12, %c0_13] : memref<1x384xf32, #tpu.memory_space<vmem>>, vector<1x384xf32>
    tpu.vector_store %arg4[%c0_12, %c0_13], %52 {strides = array<i32>} : memref<1x384xf32, #tpu.memory_space<vmem>>, vector<1x384xf32>,
    return
  }
  func.func @transform_0(%arg0: i32) -> (i32, i32) {
    %c0_i32 = arith.constant 0 : i32
    %c0_i32_0 = arith.constant 0 : i32
    return %arg0, %c0_i32 : i32, i32
  }
  func.func @transform_1(%arg0: i32) -> (i32, i32) {
    %c0_i32 = arith.constant 0 : i32
    %c0_i32_0 = arith.constant 0 : i32
    return %c0_i32, %arg0 : i32, i32
  }
  func.func @transform_2(%arg0: i32) -> (i32, i32) {
    %c0_i32 = arith.constant 0 : i32
    %c0_i32_0 = arith.constant 0 : i32
    return %c0_i32, %arg0 : i32, i32
  }
  func.func @transform_3(%arg0: i32) -> (i32, i32) {
    %c0_i32 = arith.constant 0 : i32
    %c0_i32_0 = arith.constant 0 : i32
    return %c0_i32, %arg0 : i32, i32
  }
}

</mosaic_0001>

<bundles_post_ra>
// kernel: tpu_custom_call.1
= control target key start
LH: loop header
LB: loop body
LE: loop exit
PB: predicated region body
PF: predicated region fallthrough
CT: control target
= control target key end

     0   :  { %s995_s0 = inlined_call_operand.vmem [shape: f32[300,16], index: 0, kind: input, shape index: {}]   ;;  %s996_s1 = inlined_call_operand.vmem [shape: s32[1,384], index: 1, kind: input, shape index: {}]   ;;  %s997_s2 = inlined_call_operand.vmem [shape: f32[1,384], index: 2, kind: input, shape index: {}]   ;;  %s998_s3 = inlined_call_operand.hbm [shape: f32[1,384], index: 3, kind: output, shape index: {}]  }
   0x1   :  { %v15_v0 = vld [vmem:[%s995_s0] sm:$0xff]  ;;  %v16_v2 = vld [vmem:[%s995_s0 + $0x8] sm:$0xff]  ;;  %v17_v4 = vld [vmem:[%s995_s0 + $0x10] sm:$0xff] }
   0x2   :  { %63 = vxpose.xlu0.b32.start [1/16] (narrow) %v15_v0, 16  ;;  %v31_v1 = vld [vmem:[%s995_s0 + $0x80] sm:$0xff]  ;;  %v32_v3 = vld [vmem:[%s995_s0 + $0x88] sm:$0xff]  ;;  %v33_v5 = vld [vmem:[%s995_s0 + $0x90] sm:$0xff] }
   0x3   :  { %95 = vxpose.xlu1.b32.start [1/16] (narrow) %v31_v1, 16  ;;  %v18_v6 = vld [vmem:[%s995_s0 + $0x18] sm:$0xff]  ;;  %v19_v8 = vld [vmem:[%s995_s0 + $0x20] sm:$0xff] }
   0x4   :  { %v34_v7 = vld [vmem:[%s995_s0 + $0x98] sm:$0xff]  ;;  %v35_v9 = vld [vmem:[%s995_s0 + $0xa0] sm:$0xff] }
   0x6   :  { %64 = vxpose.xlu0.b32.cont [2/16] (narrow) %v16_v2, 16 }
   0x7   :  { %96 = vxpose.xlu1.b32.cont [2/16] (narrow) %v32_v3, 16 }
   0xa   :  { %65 = vxpose.xlu0.b32.cont [3/16] (narrow) %v17_v4, 16 }
   0xb   :  { %97 = vxpose.xlu1.b32.cont [3/16] (narrow) %v33_v5, 16 }
   0xe   :  { %66 = vxpose.xlu0.b32.cont [4/16] (narrow) %v18_v6, 16 }
   0xf   :  { %98 = vxpose.xlu1.b32.cont [4/16] (narrow) %v34_v7, 16 }
  0x10   :  { %8 = vsyncpa [#allocation3], 0  ;;  %v20_v10 = vld [vmem:[%s995_s0 + $0x28] sm:$0xff]  ;;  %v21_v12 = vld [vmem:[%s995_s0 + $0x30] sm:$0xff]  ;;  %v161_v59 = vlaneseq  ;;  %v572_v4 = vmov 0  }
  0x11   :  { %v36_v11 = vld [vmem:[%s995_s0 + $0xa8] sm:$0xff]  ;;  %v37_v13 = vld [vmem:[%s995_s0 + $0xb0] sm:$0xff]  ;;  %v22_v14 = vld [vmem:[%s995_s0 + $0x38] sm:$0xff] }
  0x12   :  { %67 = vxpose.xlu0.b32.cont [5/16] (narrow) %v19_v8, 16  ;;  %v38_v15 = vld [vmem:[%s995_s0 + $0xb8] sm:$0xff]  ;;  %v23_v16 = vld [vmem:[%s995_s0 + $0x40] sm:$0xff]  ;;  %v24_v18 = vld [vmem:[%s995_s0 + $0x48] sm:$0xff]  ;;  %v757_v1 = vshrl.u32 %v161_v59, 7 }
  0x13   :  { %99 = vxpose.xlu1.b32.cont [5/16] (narrow) %v35_v9, 16  ;;  %v39_v17 = vld [vmem:[%s995_s0 + $0xc0] sm:$0xff]  ;;  %v40_v19 = vld [vmem:[%s995_s0 + $0xc8] sm:$0xff]  ;;  %v25_v20 = vld [vmem:[%s995_s0 + $0x50] sm:$0xff] }
  0x14   :  { %v41_v21 = vld [vmem:[%s995_s0 + $0xd0] sm:$0xff]  ;;  %v26_v22 = vld [vmem:[%s995_s0 + $0x58] sm:$0xff]  ;;  %v27_v24 = vld [vmem:[%s995_s0 + $0x60] sm:$0xff]  ;;  %v181_v3 = vsub.s32 1, %v757_v1  ;;  %v767_v7 = vsub.s32 0, %v757_v1 }
  0x15   :  { %v42_v23 = vld [vmem:[%s995_s0 + $0xd8] sm:$0xff]  ;;  %v43_v25 = vld [vmem:[%s995_s0 + $0xe0] sm:$0xff]  ;;  %v28_v26 = vld [vmem:[%s995_s0 + $0x68] sm:$0xff] }
  0x16   :  { %68 = vxpose.xlu0.b32.cont [6/16] (narrow) %v20_v10, 16  ;;  %v44_v27 = vld [vmem:[%s995_s0 + $0xe8] sm:$0xff]  ;;  %v29_v28 = vld [vmem:[%s995_s0 + $0x70] sm:$0xff]  ;;  %v30_v30 = vld [vmem:[%s995_s0 + $0x78] sm:$0xff] }
  0x17   :  { %100 = vxpose.xlu1.b32.cont [6/16] (narrow) %v36_v11, 16  ;;  %v45_v29 = vld [vmem:[%s995_s0 + $0xf0] sm:$0xff]  ;;  %v46_v31 = vld [vmem:[%s995_s0 + $0xf8] sm:$0xff]  ;;  %v47_v32 = vld [vmem:[%s995_s0 + $0x100] sm:$0xff] }
  0x18   :  { %v48_v33 = vld [vmem:[%s995_s0 + $0x108] sm:$0xff]  ;;  %v49_v34 = vld [vmem:[%s995_s0 + $0x110] sm:$0xff]  ;;  %v50_v35 = vld [vmem:[%s995_s0 + $0x118] sm:$0xff] }
  0x19   :  { %v51_v36 = vld [vmem:[%s995_s0 + $0x120] sm:$0xff]  ;;  %v52_v37 = vld [vmem:[%s995_s0 + $0x128] sm:$0xff]  ;;  %v53_v38 = vld [vmem:[%s995_s0 + $0x130] sm:$0xff] }
  0x1a   :  { %69 = vxpose.xlu0.b32.cont [7/16] (narrow) %v21_v12, 16  ;;  %v54_v39 = vld [vmem:[%s995_s0 + $0x138] sm:$0xff]  ;;  %v55_v40 = vld [vmem:[%s995_s0 + $0x140] sm:$0xff]  ;;  %v56_v41 = vld [vmem:[%s995_s0 + $0x148] sm:$0xff] }
  0x1b   :  { %101 = vxpose.xlu1.b32.cont [7/16] (narrow) %v37_v13, 16  ;;  %v57_v42 = vld [vmem:[%s995_s0 + $0x150] sm:$0xff]  ;;  %v58_v43 = vld [vmem:[%s995_s0 + $0x158] sm:$0xff]  ;;  %v59_v44 = vld [vmem:[%s995_s0 + $0x160] sm:$0xff] }
  0x1c   :  { %v60_v45 = vld [vmem:[%s995_s0 + $0x168] sm:$0xff]  ;;  %v61_v46 = vld [vmem:[%s995_s0 + $0x170] sm:$0xff]  ;;  %v62_v47 = vld [vmem:[%s995_s0 + $0x178] sm:$0xff] }
  0x1d   :  { %v754_v63 = vld [vmem:[%s996_s1] sm:$0x7] }
  0x1e   :  { %70 = vxpose.xlu0.b32.cont [8/16] (narrow) %v22_v14, 16  ;;  %vm173_vm0 = vcmp.ge.s32.totalorder %v754_v63, 0  ;;  %vm193_vm1 = vcmp.lt.s32.totalorder %v754_v63, 16 }
  0x1f   :  { %102 = vxpose.xlu1.b32.cont [8/16] (narrow) %v38_v15, 16  ;;  %v762_v5 = vsel %vm173_vm0, 1, %v572_v4  ;;  %v764_v6 = vsel %vm193_vm1, 1, %v572_v4 }
  0x20   :  { %v182_v8 = vrot.slane %v762_v5, %v181_v3  ;;  %v202_v9 = vrot.slane %v764_v6, %v181_v3  ;;  %v178_v10 = vrot.slane %v762_v5, %v767_v7  ;;  %v198_v11 = vrot.slane %v764_v6, %v767_v7 }
  0x22   :  { %71 = vxpose.xlu0.b32.cont [9/16] (narrow) %v23_v16, 16  ;;  %vm188_vm2 = vcmp.ne.s32.totalorder %v182_v8, 0  ;;  %vm208_vm3 = vcmp.ne.s32.totalorder %v202_v9, 0  ;;  %v220_v16 = vrot.slane %v754_v63, %v181_v3  ;;  %vm187_vm4 = vcmp.ne.s32.totalorder %v178_v10, 0 }
  0x23   :  { %103 = vxpose.xlu1.b32.cont [9/16] (narrow) %v39_v17, 16  ;;  %vm207_vm5 = vcmp.ne.s32.totalorder %v198_v11, 0  ;;  %vm211_vm6 = vmand %vm188_vm2, %vm208_vm3 }
  0x24   :  { %vm210_vm7 = vmand %vm187_vm4, %vm207_vm5 }
  0x26   :  { %72 = vxpose.xlu0.b32.cont [10/16] (narrow) %v24_v18, 16 }
  0x27   :  { %104 = vxpose.xlu1.b32.cont [10/16] (narrow) %v40_v19, 16  ;;  %v216_v19 = vrot.slane %v754_v63, %v767_v7 }
  0x2a   :  { %73 = vxpose.xlu0.b32.cont [11/16] (narrow) %v25_v20, 16 }
  0x2b   :  { %105 = vxpose.xlu1.b32.cont [11/16] (narrow) %v41_v21, 16 }
  0x2e   :  { %74 = vxpose.xlu0.b32.cont [12/16] (narrow) %v26_v22, 16  ;;  %v226_v22 = vsel %vm211_vm6, %v220_v16, 4294967295 }
  0x2f   :  { %106 = vxpose.xlu1.b32.cont [12/16] (narrow) %v42_v23, 16  ;;  %v225_v23 = vsel %vm210_vm7, %v216_v19, 4294967295 }
  0x32   :  { %75 = vxpose.xlu0.b32.cont [13/16] (narrow) %v27_v24, 16  ;;  %v791_v24 = vrot.slane %v226_v22, %v767_v7 }
  0x33   :  { %107 = vxpose.xlu1.b32.cont [13/16] (narrow) %v43_v25, 16  ;;  %v794_v25 = vadd.s32 8, %v757_v1 }
  0x34   :  { %vm244_vm8 = vcmp.eq.s32.totalorder %v757_v1, %v791_v24 }
  0x35   :  { %vm247_vm9 = vcmp.eq.s32.totalorder %v794_v25, %v791_v24 }
  0x36   :  { %76 = vxpose.xlu0.b32.cont [14/16] (narrow) %v28_v26, 16  ;;  %v797_v26 = vrot.slane %v225_v23, %v767_v7 }
  0x37   :  { %108 = vxpose.xlu1.b32.cont [14/16] (narrow) %v44_v27, 16  ;;  %v802_v27 = vld [vmem:[%s997_s2] sm:$0x7]  ;;  %s574_s2 = smov [#allocation2]  }
  0x38   :  { %vm243_vm10 = vcmp.eq.s32.totalorder %v757_v1, %v797_v26  ;;  %vm246_vm13 = vcmp.eq.s32.totalorder %v794_v25, %v797_v26  ;;  %s501_s29 = sshll.u32 %s574_s2, 4  ;;  %s502_s29 = int_to_ptr.vmem [resolvable:$true] %s501_s29 }
  0x39   :  { %s548_s30 = scalar_lea.vmem %s502_s29, 48  ;;  %s552_s4 = scalar_lea.vmem %s502_s29, 64 }
  0x3a   :  { %77 = vxpose.xlu0.b32.cont [15/16] (narrow) %v29_v28, 16  ;;  %v162_v28 = vand.u32 127, %v161_v59  ;;  %p549_p0 = scmp.ne.s32.totalorder %s502_s29, %s548_s30  ;;  %p553_p1 = scmp.lt.s32.totalorder %s502_s29, %s502_s29 }
  0x3b   :  { %109 = vxpose.xlu1.b32.cont [15/16] (narrow) %v45_v29, 16  ;;  %v810_v29 = vsub.s32 2, %v757_v1  ;;  %p554_p2 = scmp.lt.s32.totalorder %s552_s4, %s548_s30 }
  0x3d   :  { %v224_v24 = vrot.slane %v754_v63, %v810_v29  ;;  %p555_p3 = por %p554_p2, %p553_p1 }
  0x3e   :  { %78 = vxpose.xlu0.b32.end [16/16] (narrow) %v30_v30, 16  ;;  %v813_v30 = vrot.slane %v802_v27, %v181_v3 }
  0x3f   :  { %110 = vxpose.xlu1.b32.end [16/16] (narrow) %v46_v31, 16  ;;  %p556_p4 = pnand %p555_p3, %p549_p0 }
  0x42   :  { %127 = vxpose.xlu0.b32.start [1/16] (narrow) %v47_v32, 16 }
  0x46   :  { %128 = vxpose.xlu0.b32.cont [2/16] (narrow) %v48_v33, 16  ;;  %v820_v33 = vrot.slane %v802_v27, %v767_v7 }
  0x4a   :  { %129 = vxpose.xlu0.b32.cont [3/16] (narrow) %v49_v34, 16 }
  0x4e   :  { %130 = vxpose.xlu0.b32.cont [4/16] (narrow) %v50_v35, 16 }
  0x52   :  { %131 = vxpose.xlu0.b32.cont [5/16] (narrow) %v51_v36, 16  ;;  %v827_v36 = vsel %vm244_vm8, %v813_v30, 0.0 }
  0x56   :  { %132 = vxpose.xlu0.b32.cont [6/16] (narrow) %v52_v37, 16 }
  0x5a   :  { %133 = vxpose.xlu0.b32.cont [7/16] (narrow) %v53_v38, 16  ;;  %v834_v38 = vsel %vm247_vm9, %v813_v30, 0.0 }
  0x5e   :  { %134 = vxpose.xlu0.b32.cont [8/16] (narrow) %v54_v39, 16 }
  0x62   :  { %135 = vxpose.xlu0.b32.cont [9/16] (narrow) %v55_v40, 16  ;;  %v840_v40 = vsel %vm243_vm10, %v820_v33, 0.0 }
  0x66   :  { %136 = vxpose.xlu0.b32.cont [10/16] (narrow) %v56_v41, 16  ;;  %v843_v41 = vadd.s32 256, %v162_v28 }
  0x68   :  { %vm172_vm4 = vcmp.lt.s32.totalorder %v843_v41, 300 }
  0x6a   :  { %137 = vxpose.xlu0.b32.cont [11/16] (narrow) %v57_v42, 16  ;;  %v186_v42 = vrot.slane %v762_v5, %v810_v29 }
  0x6c   :  { %vm917_vm5 = vcmp.ne.s32.totalorder %v186_v42, 0 }
  0x6d   :  { %vm946_vm6 = vmand %vm172_vm4, %vm917_vm5 }
  0x6e   :  { %138 = vxpose.xlu0.b32.cont [12/16] (narrow) %v58_v43, 16 }
  0x72   :  { %139 = vxpose.xlu0.b32.cont [13/16] (narrow) %v59_v44, 16 }
  0x76   :  { %140 = vxpose.xlu0.b32.cont [14/16] (narrow) %v60_v45, 16 }
  0x7a   :  { %141 = vxpose.xlu0.b32.cont [15/16] (narrow) %v61_v46, 16 }
  0x7e   :  { %142 = vxpose.xlu0.b32.end [16/16] (narrow) %v62_v47, 16 }
  0x82   :  { %v741_v49 = vpop.trf.xlu0 }
  0x83   :  { %v739_v48 = vpop.trf.xlu1  ;;  %v249_v53 = vand.u32 2147483647, %v741_v49  ;;  %vm357_vm11 = vcmp.ge.f32.partialorder %v741_v49, 0.0 }
  0x84   :  { %v250_v51 = vand.u32 2147483647, %v739_v48  ;;  %vm358_vm12 = vcmp.ge.f32.partialorder %v739_v48, 0.0 }
  0x85   :  { %v255_v57 = vsub.f32 0.0, %v249_v53 }
  0x86   :  { %v746_v52 = vpop.trf.xlu0  ;;  %v256_v56 = vsub.f32 0.0, %v250_v51 }
  0x87   :  { %v743_v50 = vpop.trf.xlu1  ;;  %v252_v55 = vand.u32 2147483647, %v746_v52  ;;  %v261_v62 = vmul.f32 1.442695, %v255_v57  ;;  %vm360_vm14 = vcmp.ge.f32.partialorder %v746_v52, 0.0 }
  0x88   :  { %v253_v54 = vand.u32 2147483647, %v743_v50  ;;  %v263_v61 = vmul.f32 1.442695, %v256_v56  ;;  %vm361_vm0 = vcmp.ge.f32.partialorder %v743_v50, 0.0  ;;  %v401_v42 = vmul.f32 %v834_v38, %v743_v50 }
  0x89   :  { %v258_v60 = vsub.f32 0.0, %v252_v55 }
  0x8a   :  { %v259_v58 = vsub.f32 0.0, %v253_v54  ;;  %512 = vpow2.f32 %v263_v61 }
  0x8b   :  { %v267_v2 = vmul.f32 1.442695, %v258_v60  ;;  %514 = vpow2.f32 %v261_v62 }
  0x8c   :  { %v269_v0 = vmul.f32 1.442695, %v259_v58 }
  0x8e   :  { %516 = vpow2.f32 %v269_v0 }
  0x8f   :  { %518 = vpow2.f32 %v267_v2 }
  0x94   :  { %v775_v12 = vpop.eup %512 }
  0x95   :  { %v777_v13 = vpop.eup %514  ;;  %v288_v17 = vadd.f32 1.0, %v775_v12  ;;  %v291_v32 = vmul.f32 -0.5, %v775_v12  ;;  %v294_v51 = vand.u32 2147483647, %v775_v12 }
  0x96   :  { %v279_v18 = vadd.f32 1.0, %v777_v13  ;;  %v282_v34 = vmul.f32 -0.5, %v777_v13  ;;  %v285_v37 = vand.u32 2147483647, %v777_v13 }
  0x97   :  { %520 = vrcp.f32 %v288_v17  ;;  %v292_v47 = vadd.f32 1.0, %v291_v32  ;;  %vm872_vm1 = vcmp.lt.f32.partialorder %v294_v51, 0.0004427343 }
  0x98   :  { %v779_v14 = vpop.eup %516  ;;  %522 = vrcp.f32 %v279_v18  ;;  %v283_v53 = vadd.f32 1.0, %v282_v34  ;;  %vm858_vm15 = vcmp.lt.f32.partialorder %v285_v37, 0.0004427343 }
  0x99   :  { %v781_v15 = vpop.eup %518  ;;  %v315_v20 = vadd.f32 1.0, %v779_v14  ;;  %v318_v54 = vmul.f32 -0.5, %v779_v14  ;;  %v321_v57 = vand.u32 2147483647, %v779_v14  ;;  %v293_v16 = vmul.f32 %v775_v12, %v292_v47 }
  0x9a   :  { %v306_v21 = vadd.f32 1.0, %v781_v15  ;;  %v309_v45 = vmul.f32 -0.5, %v781_v15  ;;  %v312_v0 = vand.u32 2147483647, %v781_v15 }
  0x9b   :  { %524 = vrcp.f32 %v315_v20  ;;  %v319_v19 = vadd.f32 1.0, %v318_v54  ;;  %vm879_vm2 = vcmp.lt.f32.partialorder %v321_v57, 0.0004427343  ;;  %v277_v57 = vmax.f32 %v743_v50, 0.0 }
  0x9c   :  { %526 = vrcp.f32 %v306_v21  ;;  %v310_v8 = vadd.f32 1.0, %v309_v45  ;;  %vm885_vm3 = vcmp.lt.f32.partialorder %v312_v0, 0.0004427343 }
  0x9d   :  { %528 = vlog2.f32 %v279_v18  ;;  %v284_v18 = vmul.f32 %v777_v13, %v283_v53  ;;  %v320_v51 = vmul.f32 %v779_v14, %v319_v19 }
  0x9e   :  { %530 = vlog2.f32 %v288_v17 }
  0x9f   :  { %532 = vlog2.f32 %v306_v21 }
  0xa0   :  { %534 = vlog2.f32 %v315_v20 }
  0xa1   :  { %v521_v31 = vpop.eup %520 }
  0xa2   :  { %v523_v35 = vpop.eup %522  ;;  %v364_v55 = vmul.f32 %v521_v31, %v775_v12 }
  0xa3   :  { %v363_v61 = vmul.f32 %v523_v35, %v777_v13 }
  0xa4   :  { %v370_v21 = vsel %vm358_vm12, %v521_v31, %v364_v55  ;;  %v311_v31 = vmul.f32 %v781_v15, %v310_v8  ;;  %v273_v55 = vmax.f32 %v741_v49, 0.0 }
  0xa5   :  { %v525_v39 = vpop.eup %524  ;;  %v369_v12 = vsel %vm357_vm11, %v523_v35, %v363_v61 }
  0xa6   :  { %v527_v44 = vpop.eup %526  ;;  %v367_v62 = vmul.f32 %v525_v39, %v779_v14  ;;  %v409_v35 = vsub.f32 %v820_v33, %v369_v12 }
  0xa7   :  { %v529_v60 = vpop.eup %528  ;;  %v366_v2 = vmul.f32 %v527_v44, %v781_v15  ;;  %v394_v15 = vsel %vm246_vm13, %v820_v33, 0.0 }
  0xa8   :  { %v531_v4 = vpop.eup %530  ;;  %v373_v28 = vsel %vm361_vm0, %v525_v39, %v367_v62  ;;  %v281_v37 = vmul.f32 0.6931472, %v529_v60  ;;  %v415_v56 = vand.u32 2147483647, %v409_v35 }
  0xa9   :  { %v533_v11 = vpop.eup %532  ;;  %v372_v13 = vsel %vm360_vm14, %v527_v44, %v366_v2  ;;  %v290_v34 = vmul.f32 0.6931472, %v531_v4  ;;  %v413_v39 = vsub.f32 %v813_v30, %v373_v28  ;;  %v274_v44 = vmax.f32 %v739_v48, 0.0 }
  0xaa   :  { %v535_v20 = vpop.eup %534  ;;  %v308_v53 = vmul.f32 0.6931472, %v533_v11  ;;  %v412_v54 = vsub.f32 %v820_v33, %v372_v13  ;;  %v206_v4 = vrot.slane %v764_v6, %v810_v29  ;;  %v397_v11 = vmul.f32 %v840_v40, %v741_v49 }
  0xab   :  { %v317_v47 = vmul.f32 0.6931472, %v535_v20  ;;  %v296_v14 = vsel %vm872_vm1, %v293_v16, %v290_v34  ;;  %v419_v0 = vand.u32 2147483647, %v413_v39 }
  0xac   :  { %v314_v62 = vsel %vm885_vm3, %v311_v31, %v308_v53  ;;  %v418_v2 = vand.u32 2147483647, %v412_v54  ;;  %v334_v8 = vadd.f32 %v296_v14, %v274_v44  ;;  %vm950_vm7 = vcmp.ne.s32.totalorder %v206_v4, 0 }
  0xad   :  { %v323_v61 = vsel %vm879_vm2, %v320_v51, %v317_v47  ;;  %v425_v49 = vsel %vm247_vm9, %v419_v0, %v373_v28 }
  0xae   :  { %v337_v5 = vadd.f32 %v323_v61, %v277_v57  ;;  %v424_v50 = vsel %vm246_vm13, %v418_v2, %v372_v13 }
  0xaf   :  { %v430_v28 = vmul.f32 %v424_v50, %v424_v50 }
  0xc2   :  { %v847_v43 = vpop.trf.xlu0 }
  0xc3   :  { %v251_v46 = vand.u32 2147483647, %v847_v43 }
  0xc5   :  { %v257_v58 = vsub.f32 0.0, %v251_v46  ;;  %v410_v46 = vsub.f32 %v813_v30, %v370_v21  ;;  %v287_v30 = vsel %vm858_vm15, %v284_v18, %v281_v37  ;;  %v400_v18 = vmul.f32 %v394_v15, %v746_v52 }
  0xc6   :  { %v867_v3 = vpop.trf.xlu0  ;;  %vm492_vm15 = vcmp.lt.s32.totalorder %v161_v59, 384 }
  0xc7   :  { %v265_v9 = vmul.f32 1.442695, %v257_v58  ;;  %v254_v10 = vand.u32 2147483647, %v867_v3  ;;  %v276_v58 = vmax.f32 %v746_v52, 0.0  ;;  %vm362_vm14 = vcmp.ge.f32.partialorder %v867_v3, 0.0 }
  0xc8   :  { %v416_v60 = vand.u32 2147483647, %v410_v46 }
  0xc9   :  { %536 = vpow2.f32 %v265_v9  ;;  %v260_v23 = vsub.f32 0.0, %v254_v10  ;;  %v398_v9 = vmul.f32 %v827_v36, %v739_v48  ;;  %v333_v10 = vadd.f32 %v287_v30, %v273_v55 }
  0xca   :  { %v336_v17 = vadd.f32 %v314_v62, %v276_v58  ;;  %v422_v6 = vsel %vm244_vm8, %v416_v60, %v370_v21  ;;  %v421_v48 = vsel %vm243_vm10, %v415_v56, %v369_v12  ;;  %v407_v21 = vsub.f32 %v337_v5, %v401_v42  ;;  %vm212_vm8 = vmand %vm946_vm6, %vm950_vm7 }
  0xcb   :  { %v271_v45 = vmul.f32 1.442695, %v260_v23  ;;  %v404_v38 = vsub.f32 %v334_v8, %v398_v9  ;;  %v403_v40 = vsub.f32 %v333_v10, %v397_v11  ;;  %v428_v20 = vmul.f32 %v422_v6, %v422_v6 }
  0xcc   :  { %v406_v22 = vsub.f32 %v336_v17, %v400_v18  ;;  %v427_v23 = vmul.f32 %v421_v48, %v421_v48  ;;  %v431_v12 = vmul.f32 %v425_v49, %v425_v49  ;;  %v227_v13 = vsel %vm212_vm8, %v224_v24, 4294967295 }
  0xcd   :  { %538 = vpow2.f32 %v271_v45  ;;  %v434_v34 = vmul.f32 %v428_v20, %v404_v38  ;;  %v242_v47 = vrot.slane %v227_v13, %v767_v7  ;;  %v387_v55 = vrot.slane %v802_v27, %v810_v29 }
  0xce   :  { %v433_v63 = vmul.f32 %v427_v23, %v403_v40  ;;  %v437_v37 = vmul.f32 %v431_v12, %v407_v21  ;;  %v436_v31 = vmul.f32 %v430_v28, %v406_v22  ;;  %vm359_vm10 = vcmp.ge.f32.partialorder %v847_v43, 0.0 }
  0xcf   :  { %vm245_vm9 = vcmp.eq.s32.totalorder %v757_v1, %v242_v47  ;;  %vm248_vm11 = vcmp.eq.s32.totalorder %v794_v25, %v242_v47  ;;  %v275_v10 = vmax.f32 %v847_v43, 0.0 }
  0xd0   :  { %v446_v53 = vadd.f32 %v437_v37, %v434_v34  ;;  %v439_v35 = vadd.f32 %v436_v31, %v433_v63  ;;  %v393_v27 = vsel %vm245_vm9, %v387_v55, 0.0  ;;  %v396_v11 = vsel %vm248_vm11, %v387_v55, 0.0 }
  0xd1   :  { %v399_v50 = vmul.f32 %v393_v27, %v847_v43  ;;  %v402_v36 = vmul.f32 %v396_v11, %v867_v3  ;;  %v573_v43 = vmov 1966171168  }
  0xd2   :  { %v447_v60 = vrot.slane %v446_v53, 4  ;;  %v440_v7 = vrot.slane %v439_v35, 4  ;;  %v468_v37 = vunpack.c.l.s4 %v573_v43 }
  0xd3   :  { %v537_v16 = vpop.eup %536 }
  0xd4   :  { %v297_v19 = vadd.f32 1.0, %v537_v16  ;;  %v300_v45 = vmul.f32 -0.5, %v537_v16  ;;  %v303_v15 = vand.u32 2147483647, %v537_v16  ;;  %v448_v42 = vadd.f32 %v447_v60, %v446_v53 }
  0xd5   :  { %v441_v17 = vadd.f32 %v440_v7, %v439_v35  ;;  %v469_v25 = vunpack.c.0.s8 %v468_v37 }
  0xd6   :  { %540 = vlog2.f32 %v297_v19  ;;  %v301_v54 = vadd.f32 1.0, %v300_v45  ;;  %vm304_vm12 = vcmp.lt.f32.partialorder %v303_v15, 0.0004427343  ;;  %v449_v38 = vrot.slane %v448_v42, 2 }
  0xd7   :  { %v539_v26 = vpop.eup %538  ;;  %542 = vrcp.f32 %v297_v19  ;;  %v442_v24 = vrot.slane %v441_v17, 2  ;;  %v472_v35 = vsub.s32 %v469_v25, %v757_v1 }
  0xd8   :  { %v324_v32 = vadd.f32 1.0, %v539_v26  ;;  %v327_v46 = vmul.f32 -0.5, %v539_v26  ;;  %v330_v30 = vand.u32 2147483647, %v539_v26  ;;  %v302_v33 = vmul.f32 %v537_v16, %v301_v54 }
  0xd9   :  { %v450_v12 = vadd.f32 %v449_v38, %v448_v42  ;;  %v443_v28 = vadd.f32 %v442_v24, %v441_v17 }
  0xda   :  { %544 = vlog2.f32 %v324_v32  ;;  %v328_v44 = vadd.f32 1.0, %v327_v46  ;;  %vm331_vm13 = vcmp.lt.f32.partialorder %v330_v30, 0.0004427343 }
  0xdb   :  { %546 = vrcp.f32 %v324_v32  ;;  %v444_v34 = vrot.slane %v443_v28, 1  ;;  %v451_v63 = vrot.slane %v450_v12, 1 }
  0xdc   :  { %v329_v2 = vmul.f32 %v539_v26, %v328_v44 }
  0xdd   :  { %v445_v45 = vadd.f32 %v444_v34, %v443_v28  ;;  %v452_v46 = vadd.f32 %v451_v63, %v450_v12 }
  0xdf   :  { %v466_v53 = vcombine.low %v445_v45, %v452_v46 }
  0xe0   :  { %v541_v51 = vpop.eup %540 }
  0xe1   :  { %v543_v39 = vpop.eup %542  ;;  %v299_v57 = vmul.f32 0.6931472, %v541_v51  ;;  %v473_v44 = vrot.slane %v466_v53, %v472_v35 }
  0xe2   :  { %v365_v14 = vmul.f32 %v543_v39, %v537_v16  ;;  %v278_v16 = vmax.f32 %v867_v3, 0.0 }
  0xe3   :  { %v305_v4 = vsel %vm304_vm12, %v302_v33, %v299_v57 }
  0xe4   :  { %v545_v58 = vpop.eup %544  ;;  %v371_v61 = vsel %vm359_vm10, %v543_v39, %v365_v14  ;;  %v335_v19 = vadd.f32 %v305_v4, %v275_v10 }
  0xe5   :  { %v547_v62 = vpop.eup %546  ;;  %v411_v56 = vsub.f32 %v387_v55, %v371_v61  ;;  %v326_v0 = vmul.f32 0.6931472, %v545_v58 }
  0xe6   :  { %v368_v29 = vmul.f32 %v547_v62, %v539_v26  ;;  %v405_v26 = vsub.f32 %v335_v19, %v399_v50 }
  0xe7   :  { %v417_v8 = vand.u32 2147483647, %v411_v56  ;;  %v332_v9 = vsel %vm331_vm13, %v329_v2, %v326_v0 }
  0xe8   :  { %v374_v5 = vsel %vm362_vm14, %v547_v62, %v368_v29  ;;  %v338_v48 = vadd.f32 %v332_v9, %v278_v16 }
  0xe9   :  { %v423_v18 = vsel %vm245_vm9, %v417_v8, %v371_v61  ;;  %v414_v6 = vsub.f32 %v387_v55, %v374_v5 }
  0xea   :  { %v429_v52 = vmul.f32 %v423_v18, %v423_v18  ;;  %v408_v20 = vsub.f32 %v338_v48, %v402_v36 }
  0xeb   :  { %v420_v49 = vand.u32 2147483647, %v414_v6 }
  0xec   :  { %v435_v22 = vmul.f32 %v429_v52, %v405_v26 }
  0xed   :  { %v426_v40 = vsel %vm248_vm11, %v420_v49, %v374_v5 }
  0xee   :  { %v432_v21 = vmul.f32 %v426_v40, %v426_v40 }
  0xf0   :  { %v438_v23 = vmul.f32 %v432_v21, %v408_v20 }
  0xf2   :  { %v453_v32 = vadd.f32 %v438_v23, %v435_v22 }
  0xf4   :  { %v454_v13 = vrot.slane %v453_v32, 4 }
  0xf6   :  { %v455_v31 = vadd.f32 %v454_v13, %v453_v32 }
  0xf8   :  { %v456_v3 = vrot.slane %v455_v31, 2 }
  0xfa   :  { %v457_v47 = vadd.f32 %v456_v3, %v455_v31 }
  0xfc   :  { %v458_v51 = vrot.slane %v457_v47, 1 }
  0xfe   :  { %v459_v39 = vadd.f32 %v458_v51, %v457_v47 }
 0x100   :  { %v462_v54 = vsel %vm172_vm4, %v459_v39, 0.0 }
 0x101   :  { %v480_v55 = vrot.slane %v462_v54, %v472_v35 }
 0x103   :  { %v481_v15 = vcombine.low %v473_v44, %v480_v55 }
 0x105   :  { %v488_v14 = vrot.slane %v481_v15, %v472_v35 }
 0x107   :  { %494 = vst.msk [vmem:[#allocation2] sm:$0x7] %vm492_vm15, %v488_v14 }
 0x108   :  { %559 = shalt.err (!%p556_p4)
}
 0x109   :  { %s560_s7 = scalar_lea.hbm %s998_s3, 48 }
 0x10a   :  { %p561_p5 = scmp.ne.s32.totalorder %s998_s3, %s560_s7  ;;  %p564_p6 = scmp.lt.u32.totalorder %s560_s7, %s998_s3 }
 0x10c   :  { %p566_p7 = pnand %p564_p6, %p561_p5 }
 0x10e   :  { %569 = shalt.err (!%p566_p7)
}
 0x10f   :  { %504 = dma.vmem_to_hbm [thread:$0]  %s502_s29, 48, %s998_s3, [#allocation3]  }
 0x110   :  { %570 = dma.done.wait [#allocation3], 48  }
 0x111   :  { %571 = vsyncadd [#allocation3], 4294967248 }
 0x112   :  { %508 = vsyncpa [#allocation3], 1 }

</bundles_post_ra>
